<compile_context>
chip_gen: v6e
topology: v6e:2x2x1
jax: 0.10.0
libtpu: 0.0.40
codegen_flags: <defaults>
</compile_context>

<pallas_src>
import functools

import jax
import jax.numpy as jnp
from jax.experimental import pallas as pl
from jax.experimental.pallas import tpu as pltpu


def _round_up(x: int, m: int) -> int:
    return (x + m - 1) // m * m


# ----------------------------------------------------------------------------
# Pallas kernel: single-shot  out = x @ w + bias  (per M tile)
# ----------------------------------------------------------------------------
def _linear_bias_kernel(x_ref, w_ref, b_ref, o_ref):
    x = x_ref[...].astype(w_ref.dtype)  # bf16 cast on the VPU, hidden under DMA/MXU
    o_ref[...] = (
        jnp.dot(x, w_ref[...], preferred_element_type=jnp.float32) + b_ref[...]
    ).astype(o_ref.dtype)


# ----------------------------------------------------------------------------
# Forward pass
# ----------------------------------------------------------------------------
@functools.partial(jax.jit, static_argnames=("tm",))
def linear_classifier_forward(params, x, *, tm=1024):
    """x: (M, num_features) float32 -> (M, num_classes) float32.

    params["w_t"]: (kp, num_classes) pre-transposed, K-padded, bf16 weight.
    params["b"]:   (1, num_classes) f32 bias row.
    """
    w_t = params["w_t"]
    bias = params["b"]
    m, k = x.shape
    kp, n = w_t.shape
    assert k <= kp, (k, kp)

    # K padding only if num_features is not already lane-aligned (no-op for 128).
    if k != kp:
        x = jnp.pad(x, ((0, 0), (0, kp - k)))

    # --- M tiling ------------------------------------------------------------
    tm = _round_up(max(tm, 8), 8)
    m8 = _round_up(m, 8)
    tm_eff = min(tm, m8)
    # v7x: if the whole batch would be a single program, split into 2 so the
    # "parallel" M axis can shard across both TensorCores.
    if tm_eff >= m8 and m8 >= 16:
        tm_eff = _round_up((m8 + 1) // 2, 8)
    mp = _round_up(m, tm_eff)
    if mp != m:
        x = jnp.pad(x, ((0, mp - m), (0, 0)))

    grid = (mp // tm_eff,)

    out = pl.pallas_call(
        _linear_bias_kernel,
        out_shape=jax.ShapeDtypeStruct((mp, n), jnp.float32),
        grid=grid,
        in_specs=[
            pl.BlockSpec((tm_eff, kp), lambda i: (i, 0)),  # activations (f32)
            pl.BlockSpec((kp, n), lambda i: (0, 0)),       # weights (bf16, resident)
            pl.BlockSpec((1, n), lambda i: (0, 0)),        # bias row (f32, resident)
        ],
        out_specs=pl.BlockSpec((tm_eff, n), lambda i: (i, 0)),
        compiler_params=pltpu.CompilerParams(
            dimension_semantics=("parallel",),
        ),
        cost_estimate=pl.CostEstimate(
            flops=2 * mp * kp * n,
            transcendentals=0,
            bytes_accessed=mp * kp * 4 + kp * n * 2 + mp * n * 4,
        ),
    )(x, w_t, bias)

    if mp != m:
        out = out[:m]
    return out


# ----------------------------------------------------------------------------
# Parameter init (PyTorch nn.Linear defaults) + one-time layout prep
# ----------------------------------------------------------------------------
def init_params(key, num_features=128, num_classes=10):
    wkey, bkey = jax.random.split(key)
    bound = 1.0 / (num_features ** 0.5)  # PyTorch Linear default init
    w = jax.random.uniform(
        wkey, (num_classes, num_features), jnp.float32, -bound, bound
    )
    b = jax.random.uniform(bkey, (num_classes,), jnp.float32, -bound, bound)
    return {"w": w, "b": b}


def prepare_params(params, use_bf16=True):
    """One-time layout prep (hoisted out of the hot path): transpose W to
    (num_features, num_classes), pad K to a multiple of 128, cast to bf16, and
    reshape the bias to a (1, num_classes) f32 row."""
    w = params["w"]            # (num_classes, num_features)
    b = params["b"]            # (num_classes,)
    n, k = w.shape
    kp = _round_up(k, 128)
    cdt = jnp.bfloat16 if use_bf16 else jnp.float32
    w_t = jnp.zeros((kp, n), cdt).at[:k, :].set(jnp.transpose(w).astype(cdt))
    b_row = b.astype(jnp.float32).reshape(1, n)
    return {"w_t": w_t, "b": b_row}


if __name__ == "__main__":
    key = jax.random.PRNGKey(0)
    pkey, xkey = jax.random.split(key)

    num_features, num_classes, batch = 128, 10, 2
    raw_params = init_params(pkey, num_features, num_classes)
    params = prepare_params(raw_params)

    x = jax.random.normal(xkey, (batch, num_features), jnp.float32)

    y = linear_classifier_forward(params, x)
    y = jax.block_until_ready(y)

    assert y.shape == (batch, num_classes) and y.dtype == jnp.float32
    assert bool(jnp.all(jnp.isfinite(y)))

    # Reference check (bf16 MXU weights, f32 accumulation -> loose tolerance).
    y_ref = x @ raw_params["w"].T + raw_params["b"]
    assert bool(jnp.allclose(y, y_ref, atol=2e-2, rtol=2e-2))

    print("KERNEL_OK")
</pallas_src>

<mosaic_0001>
module attributes {stable_mosaic.version = 11 : i64} {
  func.func @_linear_bias_kernel(%arg0: i32, %arg1: memref<8x128xf32, #tpu.memory_space<vmem>>, %arg2: memref<128x10xbf16, #tpu.memory_space<vmem>>, %arg3: memref<1x10xf32, #tpu.memory_space<vmem>>, %arg4: memref<8x10xf32, #tpu.memory_space<vmem>>) attributes {dimension_semantics = [#tpu.dimension_semantics<parallel>], iteration_bounds = array<i64: 1>, scalar_prefetch = 0 : i64, scratch_operands = 0 : i64, tpu.core_type = #tpu.core_type<tc>, window_params = [{transform_indices = @transform_0, window_bounds = array<i64: 8, 128>}, {pipeline_mode = #tpu.pipeline_mode<synchronous>, transform_indices = @transform_1, window_bounds = array<i64: 128, 10>}, {pipeline_mode = #tpu.pipeline_mode<synchronous>, transform_indices = @transform_2, window_bounds = array<i64: 1, 10>}, {transform_indices = @transform_3, window_bounds = array<i64: 8, 10>}]} {
    %c0 = arith.constant 0 : index
    %c0_0 = arith.constant 0 : index
    %0 = vector.load %arg1[%c0, %c0_0] : memref<8x128xf32, #tpu.memory_space<vmem>>, vector<8x128xf32>
    %1 = arith.truncf %0 : vector<8x128xf32> to vector<8x128xbf16>
    %c0_1 = arith.constant 0 : index
    %c0_2 = arith.constant 0 : index
    %2 = vector.load %arg2[%c0_1, %c0_2] : memref<128x10xbf16, #tpu.memory_space<vmem>>, vector<128x10xbf16>
    %cst = arith.constant dense<0.000000e+00> : vector<8x10xf32>
    %3 = tpu.matmul %1, %2, %cst {dimension_numbers = #tpu.dot_dimension_numbers<[1], [0], [0], [1], [0, 0, 1, 1], [], []>} : vector<8x128xbf16>, vector<128x10xbf16>, vector<8x10xf32> -> vector<8x10xf32>
    %c0_3 = arith.constant 0 : index
    %c0_4 = arith.constant 0 : index
    %4 = vector.load %arg3[%c0_3, %c0_4] : memref<1x10xf32, #tpu.memory_space<vmem>>, vector<1x10xf32>
    %5 = vector.broadcast %4 : vector<1x10xf32> to vector<8x10xf32>
    %6 = arith.addf %3, %5 : vector<8x10xf32>
    %c0_5 = arith.constant 0 : index
    %c0_6 = arith.constant 0 : index
    %7 = vector.load %arg4[%c0_5, %c0_6] : memref<8x10xf32, #tpu.memory_space<vmem>>, vector<8x10xf32>
    tpu.vector_store %arg4[%c0_5, %c0_6], %6 {strides = array<i32>} : memref<8x10xf32, #tpu.memory_space<vmem>>, vector<8x10xf32>,
    return
  }
  func.func @transform_0(%arg0: i32) -> (i32, i32) {
    %c0_i32 = arith.constant 0 : i32
    %c0_i32_0 = arith.constant 0 : i32
    return %arg0, %c0_i32 : i32, i32
  }
  func.func @transform_1(%arg0: i32) -> (i32, i32) {
    %c0_i32 = arith.constant 0 : i32
    %c0_i32_0 = arith.constant 0 : i32
    %c0_i32_1 = arith.constant 0 : i32
    return %c0_i32, %c0_i32_0 : i32, i32
  }
  func.func @transform_2(%arg0: i32) -> (i32, i32) {
    %c0_i32 = arith.constant 0 : i32
    %c0_i32_0 = arith.constant 0 : i32
    %c0_i32_1 = arith.constant 0 : i32
    return %c0_i32, %c0_i32_0 : i32, i32
  }
  func.func @transform_3(%arg0: i32) -> (i32, i32) {
    %c0_i32 = arith.constant 0 : i32
    %c0_i32_0 = arith.constant 0 : i32
    return %arg0, %c0_i32 : i32, i32
  }
}

</mosaic_0001>

<bundles_post_ra>
// kernel: linear_classifier_forward.1
= control target key start
LH: loop header
LB: loop body
LE: loop exit
PB: predicated region body
PF: predicated region fallthrough
CT: control target
= control target key end

     0   :  { %v182_v0 = vmov 0.0   ;;  %vm183_vm0 = vmmov 0   ;;  %vm128_vm1 = vcmask 80896   ;;  %s237_s1 = inlined_call_operand.vmem [shape: bf16[128,10], index: 1, kind: input, shape index: {}]   ;;  %s238_s0 = inlined_call_operand.vmem [shape: f32[8,128], index: 0, kind: input, shape index: {}]   ;;  %s239_s2 = inlined_call_operand.vmem [shape: f32[1,10], index: 2, kind: input, shape index: {}]   ;;  %s240_s3 = inlined_call_operand.vmem [shape: f32[8,10], index: 3, kind: output, shape index: {}]  }
   0x1   :  { %152 = vmatprep.subr.bf16.mxu0 %v182_v0  ;;  %v174_v1 = vld [vmem:[%s237_s1 + $0x38] sm:$0xff]   ;;  %168 = vmatprep.mubr.msk.bf16.mxu0 %vm183_vm0, %v182_v0  ;;  %v175_v2 = vld [vmem:[%s237_s1 + $0x30] sm:$0xff]   ;;  %v176_v3 = vld [vmem:[%s237_s1 + $0x28] sm:$0xff]  }
   0x2   :  { %153 = vmatpush3.bf16.msra.mxu0 %v174_v1  ;;  %v177_v4 = vld [vmem:[%s237_s1 + $0x20] sm:$0xff]   ;;  %v178_v5 = vld [vmem:[%s237_s1 + $0x18] sm:$0xff]   ;;  %v179_v6 = vld [vmem:[%s237_s1 + $0x10] sm:$0xff]  }
   0x3   :  { %154 = vmatprep.subr.bf16.mxu0 %v182_v0  ;;  %v180_v7 = vld [vmem:[%s237_s1 + $0x8] sm:$0xff]   ;;  %v181_v8 = vld [vmem:[%s237_s1] sm:$0xff]  }
   0x4   :  { %v15_v9 = vld [vmem:[%s238_s0] sm:$0xff] }
   0x5   :  { %v16_v10 = vpack.c.bf16 %v15_v9, %v15_v9  ;;  %v134_v11 = vld [vmem:[%s239_s2] ss:$0 sm:$0xff] }
   0x6   :  { %155 = vmatpush3.bf16.msra.mxu0 %v175_v2 }
   0x7   :  { %156 = vmatprep.subr.bf16.mxu0 %v182_v0 }
   0xa   :  { %157 = vmatpush3.bf16.msra.mxu0 %v176_v3 }
   0xb   :  { %158 = vmatprep.subr.bf16.mxu0 %v182_v0 }
   0xe   :  { %159 = vmatpush3.bf16.msra.mxu0 %v177_v4 }
   0xf   :  { %160 = vmatprep.subr.bf16.mxu0 %v182_v0 }
  0x12   :  { %161 = vmatpush3.bf16.msra.mxu0 %v178_v5 }
  0x13   :  { %162 = vmatprep.subr.bf16.mxu0 %v182_v0 }
  0x16   :  { %163 = vmatpush3.bf16.msra.mxu0 %v179_v6 }
  0x17   :  { %164 = vmatprep.subr.bf16.mxu0 %v182_v0 }
  0x1a   :  { %165 = vmatpush3.bf16.msra.mxu0 %v180_v7 }
  0x1b   :  { %166 = vmatprep.subr.bf16.mxu0 %v182_v0 }
  0x1e   :  { %167 = vmatpush3.bf16.msra.mxu0 %v181_v8 }
  0x21   :  { %169 = vmatmul.mubr.bf16.vlgmr.msra.gmra.mxu0 %v16_v10 }
  0xe1   :  { %v122_v12 = vpop.f32.mrf.mxu0 }
  0xe2   :  { %v123_v13 = vadd.f32 %v134_v11, %v122_v12 }
  0xe3   :  { %v170_v14 = vpop.f32.mrf.mxu0 }
  0xe4   :  { %129 = vst.msk [vmem:[%s240_s3] sm:$0xff] %vm128_vm1, %v123_v13 }
  0xe5   :  { %v125_v15 = vpop.f32.mrf.mxu0 }
  0xe7   :  { %v171_v16 = vpop.f32.mrf.mxu0 }

</bundles_post_ra>
